<compile_context>
chip_gen: v6e
topology: v6e:2x2x1
jax: 0.10.0
libtpu: 0.0.40
codegen_flags: <defaults>
</compile_context>

<pallas_src>
import functools

import jax
import jax.numpy as jnp
from jax.experimental import pallas as pl
from jax.experimental.pallas import tpu as pltpu


def _se_kernel(x_ref, w1t_ref, w2t_ref, o_ref, *, inv_hw):
    # x block: (Bt, HW, C) in the input dtype, channels on lanes.
    x = x_ref[...]

    # ---- squeeze: global average pool over spatial (sublane axis) ----
    # Accumulate in f32 regardless of input dtype.
    y = jnp.sum(x.astype(jnp.float32), axis=1) * inv_hw            # (Bt, C)

    # ---- excitation: batched matmuls on the MXU ----
    h = jnp.dot(y, w1t_ref[...], preferred_element_type=jnp.float32)   # (Bt, Cr)
    h = jnp.maximum(h, 0.0)
    s = jnp.dot(h, w2t_ref[...], preferred_element_type=jnp.float32)   # (Bt, C)
    s = jax.nn.sigmoid(s)

    # ---- scale: lane-aligned per-channel broadcast over spatial ----
    # Multiply and store in the input dtype (bf16 stays bf16 on v6e/v7x).
    o_ref[...] = (x * s[:, None, :].astype(x.dtype)).astype(o_ref.dtype)


def _choose_batch_tile(batch, ex_bytes, target_bytes, vmem_budget_bytes):
    """Pick how many examples to process per grid step."""
    # Double-buffered input + output blocks must fit the VMEM budget.
    bt_vmem = max(1, vmem_budget_bytes // (4 * ex_bytes))
    bt = int(max(1, min(batch, max(1, target_bytes // ex_bytes), bt_vmem)))
    # If the whole batch collapsed into a single grid step, split it so the
    # pipeline / both v7x TensorCores get work -- but only if blocks stay big.
    if batch > 1 and pl.cdiv(batch, bt) < 2:
        half = int(pl.cdiv(batch, 2))
        if half * ex_bytes >= (512 << 10):
            bt = half
    return bt


def se_block(x, w1, w2, *, target_block_bytes=2 << 20, vmem_budget_bytes=40 << 20):
    """SE block forward.

    x  : (B, C, H, W)
    w1 : (C//r, C)    first Linear weight (no bias), nn.Linear layout
    w2 : (C, C//r)    second Linear weight (no bias), nn.Linear layout
    returns (B, C, H, W)
    """
    B, C, H, W = x.shape
    HW = H * W
    Cr = w1.shape[0]

    # Channels-last in-kernel layout (C on lanes).  Layout plumbing only.
    x_cl = jnp.transpose(x, (0, 2, 3, 1)).reshape(B, HW, C)
    w1_t = jnp.transpose(w1)          # (C, Cr)
    w2_t = jnp.transpose(w2)          # (Cr, C)

    ex_bytes = HW * C * x.dtype.itemsize
    bt = _choose_batch_tile(B, ex_bytes, target_block_bytes, vmem_budget_bytes)
    grid = (pl.cdiv(B, bt),)

    # VMEM: double-buffered (in + out) blocks + weights + headroom, v7x-safe.
    weight_bytes = 2 * C * Cr * 4
    vmem_needed = 4 * bt * ex_bytes + 2 * weight_bytes + (1 << 20)
    vmem_limit = int(min(64 << 20, max(vmem_needed, 16 << 20)))

    kernel = functools.partial(_se_kernel, inv_hw=1.0 / HW)

    out_cl = pl.pallas_call(
        kernel,
        out_shape=jax.ShapeDtypeStruct((B, HW, C), x.dtype),
        grid_spec=pltpu.PrefetchScalarGridSpec(
            num_scalar_prefetch=0,
            grid=grid,
            in_specs=[
                pl.BlockSpec((bt, HW, C), lambda b: (b, 0, 0)),
                pl.BlockSpec((C, Cr), lambda b: (0, 0)),
                pl.BlockSpec((Cr, C), lambda b: (0, 0)),
            ],
            out_specs=pl.BlockSpec((bt, HW, C), lambda b: (b, 0, 0)),
        ),
        compiler_params=pltpu.CompilerParams(
            dimension_semantics=("parallel",),
            vmem_limit_bytes=vmem_limit,
        ),
        # The scale is in-place safe: alias the (channels-last) input buffer.
        input_output_aliases={0: 0},
    )(x_cl, w1_t, w2_t)

    return jnp.transpose(out_cl.reshape(B, H, W, C), (0, 3, 1, 2))


def se_block_ref(x, w1, w2):
    """Pure-JAX reference mirroring the PyTorch module."""
    y = jnp.mean(x, axis=(2, 3))                 # (B, C)
    y = jnp.maximum(y @ w1.T, 0.0)               # (B, C//r)
    y = jax.nn.sigmoid(y @ w2.T)                 # (B, C)
    return x * y[:, :, None, None]


if __name__ == "__main__":
    key = jax.random.PRNGKey(0)
    k_x, k_w1, k_w2 = jax.random.split(key, 3)

    # Small shapes consistent with the module: ch_in=64, reduction=16 -> hidden=4.
    B, C, H, W = 2, 64, 8, 8
    reduction = 16
    Cr = C // reduction

    x = jax.random.normal(k_x, (B, C, H, W), dtype=jnp.float32)
    # Weights in nn.Linear layout (out_features, in_features), no bias.
    w1 = jax.random.normal(k_w1, (Cr, C), dtype=jnp.float32) * 0.1
    w2 = jax.random.normal(k_w2, (C, Cr), dtype=jnp.float32) * 0.1

    ref = se_block_ref(x, w1, w2)

    out = se_block(x, w1, w2)
    out = jax.block_until_ready(out)

    assert out.shape == (B, C, H, W)
    assert jnp.allclose(out, ref, atol=1e-5, rtol=1e-5), "mismatch vs reference"

    print("KERNEL_OK")
</pallas_src>

<mosaic_0001>
module attributes {stable_mosaic.version = 11 : i64} {
  func.func @_se_kernel(%arg0: i32, %arg1: memref<2x64x64xf32, #tpu.memory_space<vmem>>, %arg2: memref<64x4xf32, #tpu.memory_space<vmem>>, %arg3: memref<4x64xf32, #tpu.memory_space<vmem>>, %arg4: memref<2x64x64xf32, #tpu.memory_space<vmem>>) attributes {dimension_semantics = [#tpu.dimension_semantics<parallel>], iteration_bounds = array<i64: 1>, scalar_prefetch = 0 : i64, scratch_operands = 0 : i64, tpu.core_type = #tpu.core_type<tc>, window_params = [{transform_indices = @transform_0, window_bounds = array<i64: 2, 64, 64>}, {pipeline_mode = #tpu.pipeline_mode<synchronous>, transform_indices = @transform_1, window_bounds = array<i64: 64, 4>}, {pipeline_mode = #tpu.pipeline_mode<synchronous>, transform_indices = @transform_2, window_bounds = array<i64: 4, 64>}, {transform_indices = @transform_3, window_bounds = array<i64: 2, 64, 64>}]} {
    %c0 = arith.constant 0 : index
    %c0_0 = arith.constant 0 : index
    %c0_1 = arith.constant 0 : index
    %0 = vector.load %arg1[%c0, %c0_0, %c0_1] : memref<2x64x64xf32, #tpu.memory_space<vmem>>, vector<2x64x64xf32>
    %cst = arith.constant dense<0.000000e+00> : vector<2x64xf32>
    %1 = vector.multi_reduction <add>, %0, %cst [1] : vector<2x64x64xf32> to vector<2x64xf32>
    %cst_2 = arith.constant 1.562500e-02 : f32
    %2 = vector.broadcast %cst_2 : f32 to vector<2x64xf32>
    %3 = arith.mulf %1, %2 : vector<2x64xf32>
    %c0_3 = arith.constant 0 : index
    %c0_4 = arith.constant 0 : index
    %4 = vector.load %arg2[%c0_3, %c0_4] : memref<64x4xf32, #tpu.memory_space<vmem>>, vector<64x4xf32>
    %cst_5 = arith.constant dense<0.000000e+00> : vector<2x4xf32>
    %5 = tpu.matmul %3, %4, %cst_5 {dimension_numbers = #tpu.dot_dimension_numbers<[1], [0], [0], [1], [0, 0, 1, 1], [], []>} : vector<2x64xf32>, vector<64x4xf32>, vector<2x4xf32> -> vector<2x4xf32>
    %cst_6 = arith.constant 0.000000e+00 : f32
    %6 = vector.broadcast %cst_6 : f32 to vector<2x4xf32>
    %7 = arith.maximumf %5, %6 : vector<2x4xf32>
    %c0_7 = arith.constant 0 : index
    %c0_8 = arith.constant 0 : index
    %8 = vector.load %arg3[%c0_7, %c0_8] : memref<4x64xf32, #tpu.memory_space<vmem>>, vector<4x64xf32>
    %cst_9 = arith.constant dense<0.000000e+00> : vector<2x64xf32>
    %9 = tpu.matmul %7, %8, %cst_9 {dimension_numbers = #tpu.dot_dimension_numbers<[1], [0], [0], [1], [0, 0, 1, 1], [], []>} : vector<2x4xf32>, vector<4x64xf32>, vector<2x64xf32> -> vector<2x64xf32>
    %10 = arith.negf %9 : vector<2x64xf32>
    %11 = math.exp %10 : vector<2x64xf32>
    %cst_10 = arith.constant 1.000000e+00 : f32
    %12 = vector.broadcast %cst_10 : f32 to vector<2x64xf32>
    %13 = arith.addf %12, %11 : vector<2x64xf32>
    %14 = arith.divf %12, %13 : vector<2x64xf32>
    %15 = vector.shape_cast %14 : vector<2x64xf32> to vector<2x1x64xf32>
    %16 = vector.broadcast %15 : vector<2x1x64xf32> to vector<2x64x64xf32>
    %17 = arith.mulf %0, %16 : vector<2x64x64xf32>
    %c0_11 = arith.constant 0 : index
    %c0_12 = arith.constant 0 : index
    %c0_13 = arith.constant 0 : index
    %18 = vector.load %arg4[%c0_11, %c0_12, %c0_13] : memref<2x64x64xf32, #tpu.memory_space<vmem>>, vector<2x64x64xf32>
    tpu.vector_store %arg4[%c0_11, %c0_12, %c0_13], %17 {strides = array<i32>} : memref<2x64x64xf32, #tpu.memory_space<vmem>>, vector<2x64x64xf32>,
    return
  }
  func.func @transform_0(%arg0: i32) -> (i32, i32, i32) {
    %c0_i32 = arith.constant 0 : i32
    %c0_i32_0 = arith.constant 0 : i32
    %c0_i32_1 = arith.constant 0 : i32
    return %arg0, %c0_i32, %c0_i32_0 : i32, i32, i32
  }
  func.func @transform_1(%arg0: i32) -> (i32, i32) {
    %c0_i32 = arith.constant 0 : i32
    %c0_i32_0 = arith.constant 0 : i32
    %c0_i32_1 = arith.constant 0 : i32
    return %c0_i32, %c0_i32_0 : i32, i32
  }
  func.func @transform_2(%arg0: i32) -> (i32, i32) {
    %c0_i32 = arith.constant 0 : i32
    %c0_i32_0 = arith.constant 0 : i32
    %c0_i32_1 = arith.constant 0 : i32
    return %c0_i32, %c0_i32_0 : i32, i32
  }
  func.func @transform_3(%arg0: i32) -> (i32, i32, i32) {
    %c0_i32 = arith.constant 0 : i32
    %c0_i32_0 = arith.constant 0 : i32
    %c0_i32_1 = arith.constant 0 : i32
    return %arg0, %c0_i32, %c0_i32_0 : i32, i32, i32
  }
}

</mosaic_0001>

<bundles_post_ra>
// kernel: tpu_custom_call.1
= control target key start
LH: loop header
LB: loop body
LE: loop exit
PB: predicated region body
PF: predicated region fallthrough
CT: control target
= control target key end

     0   :  { %8 = vsyncpa [#allocation3], 0  ;;  %s610_s0 = inlined_call_operand.hbm [shape: f32[2,64,64], index: 0, kind: input, shape index: {}, may-alias: {0,3}]   ;;  %s611_s1 = inlined_call_operand.vmem [shape: f32[64,4], index: 1, kind: input, shape index: {}]   ;;  %s612_s2 = inlined_call_operand.vmem [shape: f32[4,64], index: 2, kind: input, shape index: {}]   ;;  %s613_s3 = inlined_call_operand.hbm [shape: f32[2,64,64], index: 3, kind: output, shape index: {}, may-alias: {0,3}]  }
   0x1   :  { %9 = vsyncpa [#allocation4], 0  ;;  %s436_s12 = smov [#allocation2]  }
   0x2   :  { %s15_s13 = sshll.u32 %s436_s12, 4  ;;  %s16_s13 = int_to_ptr.vmem [resolvable:$true] %s15_s13 }
   0x3   :  { %s400_s14 = scalar_lea.vmem %s16_s13, 2048  ;;  %p405_p1 = scmp.lt.s32.totalorder %s16_s13, %s16_s13 }
   0x4   :  { %p401_p0 = scmp.ne.s32.totalorder %s16_s13, %s400_s14  ;;  %p406_p2 = scmp.lt.s32.totalorder %s400_s14, %s400_s14 }
   0x6   :  { %p407_p3 = por %p406_p2, %p405_p1 }
   0x8   :  { %p408_p4 = pnand %p407_p3, %p401_p0 }
   0xa   :  { %411 = shalt.err (!%p408_p4)
}
   0xb   :  { %s437_s15 = smov 128   ;;  %s438_s16 = smov 8  }
   0xc   :  { %21 = dma.hbm_to_vmem [thread:$0]  %s610_s0, 2048, %s16_s13, [#allocation3], %s437_s15, %s437_s15, %s438_s16  }
   0xd   :  { %432 = dma.done.wait [#allocation3], 2048  }
   0xe   :  { %433 = vsyncadd [#allocation3], 4294965248  ;;  %v439_v0 = vmov 0.0   ;;  %vm440_vm0 = vmmov 0   ;;  %v97_v1 = vld [vmem:[%s611_s1 + $0x38] sm:$0xff]  ;;  %v96_v2 = vld [vmem:[%s611_s1 + $0x30] sm:$0xff] }
   0xf   :  { %357 = vmatprep.subr.mxu0 %v439_v0  ;;  %373 = vmatprep.mubr.msk.f32.mxu0 %vm440_vm0, %v439_v0  ;;  %vm45_vm1 = vcmask 523264   ;;  %v95_v3 = vld [vmem:[%s611_s1 + $0x28] sm:$0xff]  ;;  %v483_v4 = vld [vmem:[#allocation2] sm:$0xff]  ;;  %v487_v6 = vld [vmem:[#allocation2 + $0x10] sm:$0xff]  ;;  %vm100_vm2 = vcmask 1041409   ;;  %vm180_vm3 = vcmask 1043456  }
  0x10   :  { %376 = vmatprep.subr.mxu1 %v439_v0  ;;  %378 = vmatprep.mubr.msk.f32.mxu1 %vm440_vm0, %v439_v0  ;;  %v485_v5 = vld [vmem:[#allocation2 + $0x8] sm:$0xff]  ;;  %v489_v7 = vld [vmem:[#allocation2 + $0x18] sm:$0xff]  ;;  %v46_v8 = vsel %vm45_vm1, %v483_v4, 0.0  ;;  %v94_v9 = vld [vmem:[%s611_s1 + $0x20] sm:$0xff]  ;;  %v49_v11 = vsel %vm45_vm1, %v487_v6, 0.0  ;;  %vm176_vm4 = vcmask 31744  }
  0x11   :  { %358 = vmatpush3.msra.mxu0 %v97_v1  ;;  %v47_v10 = vsel %vm45_vm1, %v485_v5, 0.0  ;;  %v501_v12 = vld [vmem:[#allocation2 + $0x20] sm:$0xff]  ;;  %v505_v14 = vld [vmem:[#allocation2 + $0x48] sm:$0xff]  ;;  %v93_v16 = vld [vmem:[%s611_s1 + $0x18] sm:$0xff]  ;;  %v51_v19 = vsel %vm45_vm1, %v489_v7, 0.0 }
  0x12   :  { %359 = vmatprep.subr.mxu0 %v439_v0  ;;  %v503_v13 = vld [vmem:[#allocation2 + $0x40] sm:$0xff]  ;;  %v48_v15 = vadd.f32 %v47_v10, %v46_v8  ;;  %v511_v17 = vld [vmem:[#allocation2 + $0x50] sm:$0xff]  ;;  %v513_v18 = vld [vmem:[#allocation2 + $0x58] sm:$0xff]  ;;  %v68_v21 = vsel %vm45_vm1, %v505_v14, 0.0  ;;  %v53_v28 = vsel %vm45_vm1, %v501_v12, 0.0 }
  0x13   :  { %360 = vmatpush3.msra.mxu0 %v96_v2  ;;  %v67_v20 = vsel %vm45_vm1, %v503_v13, 0.0  ;;  %v521_v22 = vld [vmem:[#allocation2 + $0x28] sm:$0xff]  ;;  %v523_v23 = vld [vmem:[#allocation2 + $0x60] sm:$0xff]  ;;  %v70_v26 = vsel %vm45_vm1, %v511_v17, 0.0  ;;  %v92_v27 = vld [vmem:[%s611_s1 + $0x10] sm:$0xff]  ;;  %v72_v29 = vsel %vm45_vm1, %v513_v18, 0.0 }
  0x14   :  { %361 = vmatprep.subr.mxu0 %v439_v0  ;;  %v50_v24 = vadd.f32 %v49_v11, %v48_v15  ;;  %v69_v25 = vadd.f32 %v68_v21, %v67_v20  ;;  %v535_v30 = vld [vmem:[#allocation2 + $0x30] sm:$0xff]  ;;  %v537_v31 = vld [vmem:[#allocation2 + $0x68] sm:$0xff]  ;;  %v55_v35 = vsel %vm45_vm1, %v521_v22, 0.0  ;;  %v74_v36 = vsel %vm45_vm1, %v523_v23, 0.0  ;;  %v547_v37 = vld [vmem:[#allocation2 + $0x38] sm:$0xff] }
  0x15   :  { %362 = vmatpush3.msra.mxu0 %v95_v3  ;;  %v91_v34 = vld [vmem:[%s611_s1 + $0x8] sm:$0xff]  ;;  %v549_v38 = vld [vmem:[#allocation2 + $0x70] sm:$0xff]  ;;  %v90_v41 = vld [vmem:[%s611_s1] sm:$0xff]  ;;  %v57_v42 = vsel %vm45_vm1, %v535_v30, 0.0  ;;  %v76_v43 = vsel %vm45_vm1, %v537_v31, 0.0  ;;  %v59_v47 = vsel %vm45_vm1, %v547_v37, 0.0 }
  0x16   :  { %363 = vmatprep.subr.mxu0 %v439_v0  ;;  %v52_v32 = vadd.f32 %v51_v19, %v50_v24  ;;  %v71_v33 = vadd.f32 %v70_v26, %v69_v25  ;;  %v559_v44 = vld [vmem:[#allocation2 + $0x78] sm:$0xff]  ;;  %v78_v48 = vsel %vm45_vm1, %v549_v38, 0.0  ;;  %v175_v10 = vld [vmem:[%s612_s2] sm:$0xf]  ;;  %v441_v26 = vmov 1966171168  }
  0x17   :  { %364 = vmatpush3.msra.mxu0 %v94_v9  ;;  %v80_v51 = vsel %vm45_vm1, %v559_v44, 0.0  ;;  %377 = vmatpush3.msk.msra.mxu1 %vm180_vm3, %v175_v10  ;;  %s442_s2 = smov [#allocation5]  }
  0x18   :  { %365 = vmatprep.subr.mxu0 %v439_v0  ;;  %v54_v39 = vadd.f32 %v53_v28, %v52_v32  ;;  %v73_v40 = vadd.f32 %v72_v29, %v71_v33  ;;  %v264_v28 = vlaneseq  ;;  %s330_s8 = sshll.u32 %s442_s2, 4  ;;  %s331_s8 = int_to_ptr.vmem [resolvable:$true] %s330_s8 }
  0x19   :  { %366 = vmatpush3.msra.mxu0 %v93_v16  ;;  %s412_s9 = scalar_lea.vmem %s331_s8, 2048  ;;  %p417_p6 = scmp.lt.s32.totalorder %s331_s8, %s331_s8 }
  0x1a   :  { %367 = vmatprep.subr.mxu0 %v439_v0  ;;  %v56_v45 = vadd.f32 %v55_v35, %v54_v39  ;;  %v75_v46 = vadd.f32 %v74_v36, %v73_v40  ;;  %v265_v32 = vshrl.u32 %v264_v28, 7  ;;  %p413_p5 = scmp.ne.s32.totalorder %s331_s8, %s412_s9  ;;  %p418_p7 = scmp.lt.s32.totalorder %s412_s9, %s412_s9 }
  0x1b   :  { %368 = vmatpush3.msra.mxu0 %v92_v27  ;;  %v262_v27 = vunpack.c.l.s4 %v441_v26 }
  0x1c   :  { %369 = vmatprep.subr.mxu0 %v439_v0  ;;  %v58_v49 = vadd.f32 %v57_v42, %v56_v45  ;;  %v77_v50 = vadd.f32 %v76_v43, %v75_v46  ;;  %v285_v36 = vsub.s32 0, %v265_v32  ;;  %p419_p8 = por %p418_p7, %p417_p6 }
  0x1d   :  { %370 = vmatpush3.msra.mxu0 %v91_v34  ;;  %v263_v29 = vunpack.c.0.s8 %v262_v27 }
  0x1e   :  { %371 = vmatprep.subr.mxu0 %v439_v0  ;;  %v60_v52 = vadd.f32 %v59_v47, %v58_v49  ;;  %v79_v53 = vadd.f32 %v78_v48, %v77_v50  ;;  %p420_p9 = pnand %p419_p8, %p413_p5 }
  0x1f   :  { %372 = vmatpush3.msra.mxu0 %v90_v41  ;;  %v266_v33 = vsub.s32 %v263_v29, %v265_v32 }
  0x20   :  { %v61_v54 = vrot.slane %v60_v52, 4  ;;  %v81_v55 = vadd.f32 %v80_v51, %v79_v53 }
  0x22   :  { %v62_v56 = vadd.f32 %v61_v54, %v60_v52  ;;  %v82_v57 = vrot.slane %v81_v55, 4 }
  0x24   :  { %v63_v58 = vrot.slane %v62_v56, 2  ;;  %v83_v59 = vadd.f32 %v82_v57, %v81_v55 }
  0x26   :  { %v64_v60 = vadd.f32 %v63_v58, %v62_v56  ;;  %v84_v61 = vrot.slane %v83_v59, 2 }
  0x28   :  { %v65_v62 = vrot.slane %v64_v60, 1  ;;  %v85_v63 = vadd.f32 %v84_v61, %v83_v59 }
  0x2a   :  { %v66_v0 = vadd.f32 %v65_v62, %v64_v60  ;;  %v86_v1 = vrot.slane %v85_v63, 1 }
  0x2c   :  { %v87_v2 = vadd.f32 %v86_v1, %v85_v63  ;;  %v88_v3 = vmul.f32 0.015625, %v66_v0 }
  0x2e   :  { %v89_v8 = vmul.f32 0.015625, %v87_v2 }
  0x30   :  { %v101_v9 = vsel %vm100_vm2, %v89_v8, %v88_v3 }
  0x31   :  { %374 = vmatmul.mubr.msk.f32.vlgmr.msra.gmra.mxu0 %vm45_vm1, %v101_v9 }
  0xf1   :  { %v170_v11 = vpop.f32.mrf.mxu0 }
  0xf2   :  { %v174_v15 = vmax.f32 %v170_v11, 0.0 }
  0xf3   :  { %v375_v16 = vpop.f32.mrf.mxu0 }
  0xf4   :  { %379 = vmatmul.mubr.msk.f32.vlgmr.msra.gmra.mxu1 %vm176_vm4, %v174_v15 }
 0x1b4   :  { %v250_v19 = vpop.f32.mrf.mxu1 }
 0x1b5   :  { %v345_v20 = vmul.f32 -1.442695, %v250_v19 }
 0x1b6   :  { %v380_v21 = vpop.f32.mrf.mxu1 }
 0x1b7   :  { %388 = vpow2.f32 %v345_v20 }
 0x1c4   :  { %v389_v24 = vpop.eup %388 }
 0x1c5   :  { %v257_v25 = vadd.f32 1.0, %v389_v24 }
 0x1c7   :  { %390 = vrcp.f32 %v257_v25 }
 0x1d4   :  { %v391_v34 = vpop.eup %390 }
 0x1d5   :  { %v267_v35 = vrot.slane %v391_v34, %v266_v33 }
 0x1d7   :  { %v268_v39 = vcombine.high %v267_v35, %v267_v35  ;;  %v275_v40 = vrot.slane %v267_v35, %v266_v33 }
 0x1d9   :  { %v282_v41 = vrot.slane %v268_v39, %v266_v33  ;;  %v286_v42 = vrot.slane %v275_v40, %v285_v36 }
 0x1db   :  { %v290_v43 = vrot.slane %v282_v41, %v285_v36  ;;  %v293_v45 = vmul.f32 %v286_v42, %v483_v4  ;;  %v294_v46 = vmul.f32 %v286_v42, %v485_v5  ;;  %v295_v47 = vmul.f32 %v286_v42, %v487_v6 }
 0x1dc   :  { %v296_v48 = vmul.f32 %v286_v42, %v489_v7  ;;  %v297_v49 = vmul.f32 %v286_v42, %v501_v12  ;;  %v298_v50 = vmul.f32 %v286_v42, %v521_v22  ;;  %v299_v51 = vmul.f32 %v286_v42, %v535_v30 }
 0x1dd   :  { %v300_v52 = vmul.f32 %v286_v42, %v547_v37  ;;  %v301_v53 = vmul.f32 %v290_v43, %v503_v13  ;;  %v302_v4 = vmul.f32 %v290_v43, %v505_v14  ;;  %v303_v5 = vmul.f32 %v290_v43, %v511_v17  ;;  %309 = vst.msk [vmem:[#allocation5] sm:$0xff] %vm45_vm1, %v293_v45 }
 0x1de   :  { %310 = vst.msk [vmem:[#allocation5 + $0x8] sm:$0xff] %vm45_vm1, %v294_v46  ;;  %311 = vst.msk [vmem:[#allocation5 + $0x10] sm:$0xff] %vm45_vm1, %v295_v47  ;;  %v304_v6 = vmul.f32 %v290_v43, %v513_v18  ;;  %v305_v7 = vmul.f32 %v290_v43, %v523_v23  ;;  %v306_v12 = vmul.f32 %v290_v43, %v537_v31 }
 0x1df   :  { %v307_v22 = vmul.f32 %v290_v43, %v549_v38  ;;  %312 = vst.msk [vmem:[#allocation5 + $0x18] sm:$0xff] %vm45_vm1, %v296_v48  ;;  %313 = vst.msk [vmem:[#allocation5 + $0x20] sm:$0xff] %vm45_vm1, %v297_v49  ;;  %v308_v13 = vmul.f32 %v290_v43, %v559_v44 }
 0x1e0   :  { %314 = vst.msk [vmem:[#allocation5 + $0x28] sm:$0xff] %vm45_vm1, %v298_v50  ;;  %315 = vst.msk [vmem:[#allocation5 + $0x30] sm:$0xff] %vm45_vm1, %v299_v51 }
 0x1e1   :  { %316 = vst.msk [vmem:[#allocation5 + $0x38] sm:$0xff] %vm45_vm1, %v300_v52  ;;  %317 = vst.msk [vmem:[#allocation5 + $0x40] sm:$0xff] %vm45_vm1, %v301_v53 }
 0x1e2   :  { %318 = vst.msk [vmem:[#allocation5 + $0x48] sm:$0xff] %vm45_vm1, %v302_v4  ;;  %319 = vst.msk [vmem:[#allocation5 + $0x50] sm:$0xff] %vm45_vm1, %v303_v5 }
 0x1e3   :  { %320 = vst.msk [vmem:[#allocation5 + $0x58] sm:$0xff] %vm45_vm1, %v304_v6  ;;  %321 = vst.msk [vmem:[#allocation5 + $0x60] sm:$0xff] %vm45_vm1, %v305_v7 }
 0x1e4   :  { %322 = vst.msk [vmem:[#allocation5 + $0x68] sm:$0xff] %vm45_vm1, %v306_v12  ;;  %323 = vst.msk [vmem:[#allocation5 + $0x70] sm:$0xff] %vm45_vm1, %v307_v22 }
 0x1e5   :  { %324 = vst.msk [vmem:[#allocation5 + $0x78] sm:$0xff] %vm45_vm1, %v308_v13 }
 0x1e6   :  { %423 = shalt.err (!%p420_p9)
}
 0x1e7   :  { %336 = dma.vmem_to_hbm [thread:$0]  %s331_s8, 2048, %s613_s3, [#allocation4], %s437_s15, %s437_s15, %s438_s16  }
 0x1e8   :  { %434 = dma.done.wait [#allocation4], 2048  }
 0x1e9   :  { %435 = vsyncadd [#allocation4], 4294965248 }
 0x1ea   :  { %340 = vsyncpa [#allocation3], 1 }
 0x1eb   :  { %341 = vsyncpa [#allocation4], 1 }

</bundles_post_ra>
